<compile_context>
chip_gen: v5e
topology: v5e:2x2
jax: 0.10.0
libtpu: 0.0.40
codegen_flags: <defaults>
</compile_context>

<pallas_src>
import functools

import jax
import jax.numpy as jnp
from jax import lax
from jax.experimental import pallas as pl
from jax.experimental.pallas import tpu as pltpu


def _reduce_kernel(t_ref, l_ref, sums_ref, *, tm, valid_m):
    """Streaming per-row reduction over the flattened spatial axis.

    t_ref, l_ref : (R, tm) tiles of targets / logits, R = N*C rows.
    sums_ref     : (3, R) f32 output, resident across the whole grid:
                     row 0 = sum(targets)          per (n, c) row
                     row 1 = sum(targets * logits) per (n, c) row
                     row 2 = sum(logits)           per (n, c) row
    """
    i = pl.program_id(0)

    @pl.when(i == 0)
    def _():
        sums_ref[...] = jnp.zeros_like(sums_ref)

    t = t_ref[...].astype(jnp.float32)
    l = l_ref[...].astype(jnp.float32)

    if valid_m % tm != 0:
        # Ragged tail: mask lanes beyond the true length instead of padding
        # the tensors in HBM. (Static Python check: no cost when M % tm == 0.)
        col = i * tm + lax.broadcasted_iota(jnp.int32, t.shape, 1)
        keep = col < valid_m
        t = jnp.where(keep, t, 0.0)
        l = jnp.where(keep, l, 0.0)

    sums_ref[0, :] += jnp.sum(t, axis=-1)
    sums_ref[1, :] += jnp.sum(t * l, axis=-1)
    sums_ref[2, :] += jnp.sum(l, axis=-1)


def _pick_tm(R, M, itemsize):
    """Tile width: ~2 MiB per input block, lane dim multiple of 128 (or full M)."""
    if M <= 128:
        return M  # full-dim block (allowed even when < 128)
    budget = max(512, (2 * 1024 * 1024) // (itemsize * R))
    tm = min(budget, M)
    return max(128, (tm // 128) * 128)


def _row_sums(logits_rm, targets_rm):
    """Pallas reduction on (R, M) row-major arrays -> (3, R) f32 sums."""
    R, M = logits_rm.shape
    itemsize = max(logits_rm.dtype.itemsize, targets_rm.dtype.itemsize)
    tm = _pick_tm(R, M, itemsize)
    grid = (pl.cdiv(M, tm),)

    kernel = functools.partial(_reduce_kernel, tm=tm, valid_m=M)

    # TODO(synk): optional leading "parallel" grid axis to shard the stream
    # across the 2 TensorCores on v7x (no effect on single-TC v5e/v6e).
    return pl.pallas_call(
        kernel,
        out_shape=jax.ShapeDtypeStruct((3, R), jnp.float32),
        grid_spec=pltpu.PrefetchScalarGridSpec(
            num_scalar_prefetch=0,
            grid=grid,
            in_specs=[
                pl.BlockSpec((R, tm), lambda i: (0, i)),
                pl.BlockSpec((R, tm), lambda i: (0, i)),
            ],
            out_specs=pl.BlockSpec((3, R), lambda i: (0, 0)),
        ),
        compiler_params=pltpu.CompilerParams(
            dimension_semantics=("arbitrary",),
            vmem_limit_bytes=32 << 20,
        ),
    )(targets_rm, logits_rm)


@jax.jit
def weight_dice_loss(logits, targets):
    """JAX/Pallas equivalent of WeightDiceLoss.forward(logits, targets).

    logits, targets: (N, C, D, H, W) arrays (NCDHW, like PyTorch).
    Returns a float32 scalar loss.
    """
    smooth = 1.0
    N, C, D, H, W = logits.shape
    R = N * C
    M = D * H * W

    # Free reshape — NCDHW is already contiguous as (N*C, D*H*W). No transpose,
    # no dtype cast here (cast happens in-VMEM inside the kernel).
    logits_rm = logits.reshape(R, M)
    targets_rm = targets.reshape(R, M)

    sums = _row_sums(logits_rm, targets_rm)        # (3, N*C)
    sums = sums.reshape(3, N, C).sum(axis=1)       # fold batch -> (3, C)

    num_sum = sums[0]                  # sum(targets)          per channel
    inter_c = sums[1]                  # sum(targets * logits) per channel
    union_c = num_sum + sums[2]        # sum(targets + logits) per channel

    total = jnp.sum(num_sum)
    idx = jnp.arange(C)
    # PyTorch negative indexing (num_sum[i-1], num_sum[i-2]) wraps around.
    w = (0.1 * num_sum
         + num_sum[(idx - 1) % C]
         + num_sum[(idx - 2) % C]
         + 1.0) / (total + 1.0)
    w = jnp.where(num_sum < 1.0, 0.0, w)

    inter = jnp.sum(w * inter_c)
    union = jnp.sum(w * union_c)
    return 1.0 - 2.0 * (inter + smooth) / (union + smooth)


def _reference(logits, targets):
    """Pure-JAX reference of the PyTorch forward for validation."""
    smooth = 1.0
    num_sum = jnp.sum(targets, axis=(0, 2, 3, 4))
    C = targets.shape[1]
    idx = jnp.arange(C)
    w = (0.1 * num_sum + num_sum[(idx - 1) % C] + num_sum[(idx - 2) % C] + 1.0) \
        / (jnp.sum(num_sum) + 1.0)
    w = jnp.where(num_sum < 1.0, 0.0, w)
    inter = jnp.sum(w * jnp.sum(targets * logits, axis=(0, 2, 3, 4)))
    union = jnp.sum(w * jnp.sum(targets + logits, axis=(0, 2, 3, 4)))
    return 1.0 - 2.0 * (inter + smooth) / (union + smooth)


if __name__ == "__main__":
    key = jax.random.PRNGKey(0)
    k1, k2 = jax.random.split(key)

    # Small 5-D shapes consistent with the module: (N, C, D, H, W), C = 4
    N, C, D, H, W = 2, 4, 8, 16, 16
    logits = jax.nn.softmax(
        jax.random.normal(k1, (N, C, D, H, W), dtype=jnp.float32), axis=1)
    # One-hot-ish targets (class labels -> one-hot along channel axis)
    labels = jax.random.randint(k2, (N, D, H, W), 0, C)
    targets = jax.nn.one_hot(labels, C, axis=1, dtype=jnp.float32)

    loss = weight_dice_loss(logits, targets)
    loss = jax.block_until_ready(loss)

    ref = _reference(logits.astype(jnp.float32), targets.astype(jnp.float32))
    assert jnp.allclose(loss, ref, rtol=1e-5, atol=1e-5), (loss, ref)

    print("KERNEL_OK")
</pallas_src>

<mosaic_0001>
module attributes {stable_mosaic.version = 11 : i64} {
  func.func @_reduce_kernel(%arg0: i32, %arg1: memref<8x2048xf32, #tpu.memory_space<vmem>>, %arg2: memref<8x2048xf32, #tpu.memory_space<vmem>>, %arg3: memref<3x8xf32, #tpu.memory_space<vmem>>) attributes {dimension_semantics = [#tpu.dimension_semantics<arbitrary>], iteration_bounds = array<i64: 1>, scalar_prefetch = 0 : i64, scratch_operands = 0 : i64, tpu.core_type = #tpu.core_type<tc>, window_params = [{transform_indices = @transform_0, window_bounds = array<i64: 8, 2048>}, {transform_indices = @transform_1, window_bounds = array<i64: 8, 2048>}, {pipeline_mode = #tpu.pipeline_mode<synchronous>, transform_indices = @transform_2, window_bounds = array<i64: 3, 8>}]} {
    %c0_i32 = arith.constant 0 : i32
    %0 = arith.cmpi eq, %arg0, %c0_i32 : i32
    %1 = arith.extui %0 : i1 to i32
    %c0_i32_0 = arith.constant 0 : i32
    %2 = arith.cmpi ne, %1, %c0_i32_0 : i32
    scf.if %2 {
      %cst_16 = arith.constant 0.000000e+00 : f32
      %27 = vector.broadcast %cst_16 : f32 to vector<3x8xf32>
      %c0_17 = arith.constant 0 : index
      %c0_18 = arith.constant 0 : index
      %28 = vector.load %arg3[%c0_17, %c0_18] : memref<3x8xf32, #tpu.memory_space<vmem>>, vector<3x8xf32>
      tpu.vector_store %arg3[%c0_17, %c0_18], %27 {strides = array<i32>} : memref<3x8xf32, #tpu.memory_space<vmem>>, vector<3x8xf32>,
    } else {
    }
    %c0 = arith.constant 0 : index
    %c0_1 = arith.constant 0 : index
    %3 = vector.load %arg1[%c0, %c0_1] : memref<8x2048xf32, #tpu.memory_space<vmem>>, vector<8x2048xf32>
    %c0_2 = arith.constant 0 : index
    %c0_3 = arith.constant 0 : index
    %4 = vector.load %arg2[%c0_2, %c0_3] : memref<8x2048xf32, #tpu.memory_space<vmem>>, vector<8x2048xf32>
    %c0_4 = arith.constant 0 : index
    %c0_5 = arith.constant 0 : index
    %5 = vector.load %arg3[%c0_4, %c0_5] : memref<3x8xf32, #tpu.memory_space<vmem>>, vector<1x8xf32>
    %6 = vector.shape_cast %5 : vector<1x8xf32> to vector<8xf32>
    %cst = arith.constant dense<0.000000e+00> : vector<8xf32>
    %7 = vector.multi_reduction <add>, %3, %cst [1] : vector<8x2048xf32> to vector<8xf32>
    %8 = arith.addf %6, %7 : vector<8xf32>
    %c0_6 = arith.constant 0 : index
    %c0_7 = arith.constant 0 : index
    %9 = vector.load %arg3[%c0_6, %c0_7] : memref<3x8xf32, #tpu.memory_space<vmem>>, vector<1x8xf32>
    %10 = vector.shape_cast %9 : vector<1x8xf32> to vector<8xf32>
    %11 = vector.shape_cast %8 : vector<8xf32> to vector<1x8xf32>
    tpu.vector_store %arg3[%c0_6, %c0_7], %11 {strides = array<i32>} : memref<3x8xf32, #tpu.memory_space<vmem>>, vector<1x8xf32>,
    %c1 = arith.constant 1 : index
    %c0_8 = arith.constant 0 : index
    %12 = vector.load %arg3[%c1, %c0_8] : memref<3x8xf32, #tpu.memory_space<vmem>>, vector<1x8xf32>
    %13 = vector.shape_cast %12 : vector<1x8xf32> to vector<8xf32>
    %14 = arith.mulf %3, %4 : vector<8x2048xf32>
    %cst_9 = arith.constant dense<0.000000e+00> : vector<8xf32>
    %15 = vector.multi_reduction <add>, %14, %cst_9 [1] : vector<8x2048xf32> to vector<8xf32>
    %16 = arith.addf %13, %15 : vector<8xf32>
    %c1_10 = arith.constant 1 : index
    %c0_11 = arith.constant 0 : index
    %17 = vector.load %arg3[%c1_10, %c0_11] : memref<3x8xf32, #tpu.memory_space<vmem>>, vector<1x8xf32>
    %18 = vector.shape_cast %17 : vector<1x8xf32> to vector<8xf32>
    %19 = vector.shape_cast %16 : vector<8xf32> to vector<1x8xf32>
    tpu.vector_store %arg3[%c1_10, %c0_11], %19 {strides = array<i32>} : memref<3x8xf32, #tpu.memory_space<vmem>>, vector<1x8xf32>,
    %c2 = arith.constant 2 : index
    %c0_12 = arith.constant 0 : index
    %20 = vector.load %arg3[%c2, %c0_12] : memref<3x8xf32, #tpu.memory_space<vmem>>, vector<1x8xf32>
    %21 = vector.shape_cast %20 : vector<1x8xf32> to vector<8xf32>
    %cst_13 = arith.constant dense<0.000000e+00> : vector<8xf32>
    %22 = vector.multi_reduction <add>, %4, %cst_13 [1] : vector<8x2048xf32> to vector<8xf32>
    %23 = arith.addf %21, %22 : vector<8xf32>
    %c2_14 = arith.constant 2 : index
    %c0_15 = arith.constant 0 : index
    %24 = vector.load %arg3[%c2_14, %c0_15] : memref<3x8xf32, #tpu.memory_space<vmem>>, vector<1x8xf32>
    %25 = vector.shape_cast %24 : vector<1x8xf32> to vector<8xf32>
    %26 = vector.shape_cast %23 : vector<8xf32> to vector<1x8xf32>
    tpu.vector_store %arg3[%c2_14, %c0_15], %26 {strides = array<i32>} : memref<3x8xf32, #tpu.memory_space<vmem>>, vector<1x8xf32>,
    return
  }
  func.func @transform_0(%arg0: i32) -> (i32, i32) {
    %c0_i32 = arith.constant 0 : i32
    %c0_i32_0 = arith.constant 0 : i32
    return %c0_i32, %arg0 : i32, i32
  }
  func.func @transform_1(%arg0: i32) -> (i32, i32) {
    %c0_i32 = arith.constant 0 : i32
    %c0_i32_0 = arith.constant 0 : i32
    return %c0_i32, %arg0 : i32, i32
  }
  func.func @transform_2(%arg0: i32) -> (i32, i32) {
    %c0_i32 = arith.constant 0 : i32
    %c0_i32_0 = arith.constant 0 : i32
    %c0_i32_1 = arith.constant 0 : i32
    return %c0_i32, %c0_i32_0 : i32, i32
  }
}

</mosaic_0001>

<bundles_post_ra>
// kernel: weight_dice_loss.1
= control target key start
LH: loop header
LB: loop body
LE: loop exit
PB: predicated region body
PF: predicated region fallthrough
CT: control target
= control target key end

     0   :  { %vm15_vm0 = vcmask 59392   ;;  %v142_v33 = vmov 0.0   ;;  %vm73_vm1 = vcmask 57344   ;;  %s275_s0 = inlined_call_operand.vmem [shape: f32[8,2048], index: 0, kind: input, shape index: {}]   ;;  %s276_s1 = inlined_call_operand.vmem [shape: f32[8,2048], index: 1, kind: input, shape index: {}]   ;;  %s277_s2 = inlined_call_operand.vmem [shape: f32[3,8], index: 2, kind: output, shape index: {}]  }
   0x1   :  { %v17_v0 = vld [vmem:[%s275_s0] sm:$0xff]  ;;  %v18_v1 = vld [vmem:[%s275_s0 + $0x8] sm:$0xff]  ;;  %v19_v2 = vld [vmem:[%s275_s0 + $0x10] sm:$0xff]  ;;  %16 = vst.msk [vmem:[%s277_s2] sm:$0x7] %vm15_vm0, %v142_v33 }
   0x2   :  { %v50_v3 = vadd.f32 %v18_v1, %v17_v0  ;;  %v20_v4 = vld [vmem:[%s275_s0 + $0x18] sm:$0xff]  ;;  %v21_v6 = vld [vmem:[%s275_s0 + $0x20] sm:$0xff]  ;;  %v34_v9 = vld [vmem:[%s276_s1 + $0x8] sm:$0xff] }
   0x3   :  { %v33_v8 = vld [vmem:[%s276_s1] sm:$0xff]  ;;  %v22_v10 = vld [vmem:[%s275_s0 + $0x28] sm:$0xff]  ;;  %v35_v11 = vld [vmem:[%s276_s1 + $0x10] sm:$0xff]  ;;  %v77_v15 = vmul.f32 %v34_v9, %v18_v1 }
   0x4   :  { %v51_v5 = vadd.f32 %v50_v3, %v19_v2  ;;  %v115_v12 = vadd.f32 %v34_v9, %v33_v8  ;;  %v76_v14 = vmul.f32 %v33_v8, %v17_v0  ;;  %v23_v16 = vld [vmem:[%s275_s0 + $0x30] sm:$0xff]  ;;  %v36_v17 = vld [vmem:[%s276_s1 + $0x18] sm:$0xff]  ;;  %v78_v20 = vmul.f32 %v35_v11, %v19_v2  ;;  %v37_v22 = vld [vmem:[%s276_s1 + $0x20] sm:$0xff] }
   0x5   :  { %v24_v21 = vld [vmem:[%s275_s0 + $0x38] sm:$0xff]  ;;  %v79_v25 = vmul.f32 %v36_v17, %v20_v4  ;;  %v25_v27 = vld [vmem:[%s275_s0 + $0x40] sm:$0xff]  ;;  %v38_v28 = vld [vmem:[%s276_s1 + $0x28] sm:$0xff]  ;;  %v80_v31 = vmul.f32 %v37_v22, %v21_v6 }
   0x6   :  { %v52_v7 = vadd.f32 %v51_v5, %v20_v4  ;;  %v116_v18 = vadd.f32 %v115_v12, %v35_v11  ;;  %v92_v26 = vadd.f32 %v77_v15, %v76_v14  ;;  %v26_v34 = vld [vmem:[%s275_s0 + $0x48] sm:$0xff]  ;;  %v39_v35 = vld [vmem:[%s276_s1 + $0x30] sm:$0xff]  ;;  %v81_v38 = vmul.f32 %v38_v28, %v22_v10  ;;  %v40_v41 = vld [vmem:[%s276_s1 + $0x38] sm:$0xff] }
   0x7   :  { %v27_v40 = vld [vmem:[%s275_s0 + $0x50] sm:$0xff]  ;;  %v82_v44 = vmul.f32 %v39_v35, %v23_v16  ;;  %v28_v46 = vld [vmem:[%s275_s0 + $0x58] sm:$0xff]  ;;  %v41_v47 = vld [vmem:[%s276_s1 + $0x40] sm:$0xff]  ;;  %v83_v50 = vmul.f32 %v40_v41, %v24_v21 }
   0x8   :  { %v53_v13 = vadd.f32 %v52_v7, %v21_v6  ;;  %v117_v23 = vadd.f32 %v116_v18, %v36_v17  ;;  %v93_v32 = vadd.f32 %v92_v26, %v78_v20  ;;  %v29_v52 = vld [vmem:[%s275_s0 + $0x60] sm:$0xff]  ;;  %v42_v53 = vld [vmem:[%s276_s1 + $0x48] sm:$0xff]  ;;  %v84_v56 = vmul.f32 %v41_v47, %v25_v27  ;;  %v43_v59 = vld [vmem:[%s276_s1 + $0x50] sm:$0xff] }
   0x9   :  { %v30_v58 = vld [vmem:[%s275_s0 + $0x68] sm:$0xff]  ;;  %v85_v62 = vmul.f32 %v42_v53, %v26_v34  ;;  %v31_v0 = vld [vmem:[%s275_s0 + $0x70] sm:$0xff]  ;;  %v44_v1 = vld [vmem:[%s276_s1 + $0x58] sm:$0xff]  ;;  %v86_v4 = vmul.f32 %v43_v59, %v27_v40 }
   0xa   :  { %v54_v19 = vadd.f32 %v53_v13, %v22_v10  ;;  %v118_v29 = vadd.f32 %v117_v23, %v37_v22  ;;  %v94_v39 = vadd.f32 %v93_v32, %v79_v25  ;;  %v32_v6 = vld [vmem:[%s275_s0 + $0x78] sm:$0xff]  ;;  %v45_v7 = vld [vmem:[%s276_s1 + $0x60] sm:$0xff]  ;;  %v87_v10 = vmul.f32 %v44_v1, %v28_v46  ;;  %v46_v12 = vld [vmem:[%s276_s1 + $0x68] sm:$0xff] }
   0xb   :  { %v88_v15 = vmul.f32 %v45_v7, %v29_v52  ;;  %v47_v17 = vld [vmem:[%s276_s1 + $0x70] sm:$0xff]  ;;  %v49_v32 = vld [vmem:[%s277_s2] sm:$0x1] }
   0xc   :  { %v55_v24 = vadd.f32 %v54_v19, %v23_v16  ;;  %v119_v36 = vadd.f32 %v118_v29, %v38_v28  ;;  %v95_v45 = vadd.f32 %v94_v39, %v80_v31  ;;  %v89_v19 = vmul.f32 %v46_v12, %v30_v58 }
   0xd   :  { %v90_v23 = vmul.f32 %v47_v17, %v31_v0 }
   0xe   :  { %v56_v30 = vadd.f32 %v55_v24, %v24_v21  ;;  %v120_v42 = vadd.f32 %v119_v36, %v39_v35  ;;  %v96_v51 = vadd.f32 %v95_v45, %v81_v38  ;;  %v48_v21 = vld [vmem:[%s276_s1 + $0x78] sm:$0xff]  ;;  %v114_v36 = vld [vmem:[%s277_s2 + $0x2] sm:$0x1] }
   0xf   :  { %v91_v26 = vmul.f32 %v48_v21, %v32_v6 }
  0x10   :  { %v57_v37 = vadd.f32 %v56_v30, %v25_v27  ;;  %v121_v48 = vadd.f32 %v120_v42, %v40_v41  ;;  %v97_v57 = vadd.f32 %v96_v51, %v82_v44  ;;  %v68_v30 = vlaneseq }
  0x12   :  { %v58_v43 = vadd.f32 %v57_v37, %v26_v34  ;;  %v122_v54 = vadd.f32 %v121_v48, %v41_v47  ;;  %v98_v63 = vadd.f32 %v97_v57, %v83_v50  ;;  %v69_v31 = vand.u32 127, %v68_v30 }
  0x14   :  { %v59_v49 = vadd.f32 %v58_v43, %v27_v40  ;;  %v123_v60 = vadd.f32 %v122_v54, %v42_v53  ;;  %v99_v5 = vadd.f32 %v98_v63, %v84_v56  ;;  %v75_v40 = vld [vmem:[%s277_s2 + $0x1] sm:$0x1] }
  0x16   :  { %v60_v55 = vadd.f32 %v59_v49, %v28_v46  ;;  %v124_v2 = vadd.f32 %v123_v60, %v43_v59  ;;  %v100_v11 = vadd.f32 %v99_v5, %v85_v62 }
  0x18   :  { %v61_v61 = vadd.f32 %v60_v55, %v29_v52  ;;  %v125_v8 = vadd.f32 %v124_v2, %v44_v1  ;;  %v101_v16 = vadd.f32 %v100_v11, %v86_v4 }
  0x1a   :  { %v62_v3 = vadd.f32 %v61_v61, %v30_v58  ;;  %v126_v13 = vadd.f32 %v125_v8, %v45_v7  ;;  %v102_v20 = vadd.f32 %v101_v16, %v87_v10 }
  0x1c   :  { %v63_v9 = vadd.f32 %v62_v3, %v31_v0  ;;  %v127_v18 = vadd.f32 %v126_v13, %v46_v12  ;;  %v103_v24 = vadd.f32 %v102_v20, %v88_v15 }
  0x1e   :  { %v64_v14 = vadd.f32 %v63_v9, %v32_v6  ;;  %v128_v22 = vadd.f32 %v127_v18, %v47_v17  ;;  %v104_v27 = vadd.f32 %v103_v24, %v89_v19 }
  0x20   :  { %65 = vadd.xlane.f32.xlu0 %v64_v14  ;;  %v129_v25 = vadd.f32 %v128_v22, %v48_v21  ;;  %v105_v28 = vadd.f32 %v104_v27, %v90_v23 }
  0x22   :  { %130 = vadd.xlane.f32.xlu1 %v129_v25  ;;  %v106_v29 = vadd.f32 %v105_v28, %v91_v26 }
  0x28   :  { %107 = vadd.xlane.f32.xlu0 %v106_v29 }
  0x93   :  { %v66_v33 = vpop.xlane.xlu0 %65 }
  0x94   :  { %v70_v34 = vperm.slane %v66_v33, %v69_v31 }
  0x95   :  { %v131_v37 = vpop.xlane.xlu1 %130 }
  0x96   :  { %v72_v35 = vadd.f32 %v70_v34, %v49_v32  ;;  %v133_v38 = vperm.slane %v131_v37, %v69_v31 }
  0x98   :  { %74 = vst.msk [vmem:[%s277_s2] sm:$0x1] %vm73_vm1, %v72_v35  ;;  %v135_v39 = vadd.f32 %v133_v38, %v114_v36 }
  0x9a   :  { %136 = vst.msk [vmem:[%s277_s2 + $0x2] sm:$0x1] %vm73_vm1, %v135_v39 }
  0x9b   :  { %v108_v41 = vpop.xlane.xlu0 %107 }
  0x9c   :  { %v110_v42 = vperm.slane %v108_v41, %v69_v31 }
  0x9e   :  { %v112_v43 = vadd.f32 %v110_v42, %v75_v40 }
  0xa0   :  { %113 = vst.msk [vmem:[%s277_s2 + $0x1] sm:$0x1] %vm73_vm1, %v112_v43 }

</bundles_post_ra>
